<compile_context>
chip_gen: v5e
topology: v5e:2x2
jax: 0.10.0
libtpu: 0.0.40
codegen_flags: <defaults>
</compile_context>

<pallas_src>
import math

import jax
import jax.numpy as jnp
from jax.experimental import pallas as pl
from jax.experimental.pallas import tpu as pltpu


def _round_up(x: int, m: int) -> int:
    return ((x + m - 1) // m) * m


# ----------------------------------------------------------------------------
# Parameter setup (glue): build the real spectral mixing matrix M (L, L).
# Factored construction: M = (C diag(c*w) C^T + S diag(c*w) S^T) / L,
# C[n,f] = cos(2*pi*f*n/L), S[n,f] = sin(2*pi*f*n/L).  O(L*F) memory.
# ----------------------------------------------------------------------------
def build_mixing_matrix(freq_weights: jnp.ndarray, seq_len: int) -> jnp.ndarray:
    L = seq_len
    n_bins = L // 2 + 1                       # number of rfft bins
    freq_size = min(n_bins, freq_weights.shape[0])

    # w_full[f] = freq_weights[f] for f < freq_size else 1.0
    w_full = jnp.ones((n_bins,), dtype=jnp.float32)
    w_full = w_full.at[:freq_size].set(freq_weights[:freq_size].astype(jnp.float32))

    # irfft coefficient per bin: 1 for DC, 1 for Nyquist (even L), 2 otherwise.
    c = jnp.full((n_bins,), 2.0, dtype=jnp.float32)
    c = c.at[0].set(1.0)
    if L % 2 == 0:
        c = c.at[n_bins - 1].set(1.0)

    # Phase argument reduction: (n*f) mod L keeps angles in [0, 2*pi) before the
    # f32 cos/sin (exact in int32 for L <= 46340).
    n = jnp.arange(L, dtype=jnp.int32)
    f = jnp.arange(n_bins, dtype=jnp.int32)
    nf_mod = jnp.mod(n[:, None] * f[None, :], L).astype(jnp.float32)   # (L, F)
    ang = (2.0 * math.pi / L) * nf_mod
    C = jnp.cos(ang)                                                   # (L, F)
    S = jnp.sin(ang)                                                   # (L, F)

    cw = (c * w_full)[None, :]                                         # (1, F)
    M = (C * cw) @ C.T + (S * cw) @ S.T                                # (L, L)
    return (M / L).astype(jnp.float32)


# ----------------------------------------------------------------------------
# Pallas kernel: tiled GEMM  out = M @ x2  with f32 accumulator scratch.
#   m_ref: (tm, tk) bf16   x_ref: (tk, tn) bf16   o_ref: (tm, tn) f32
# ----------------------------------------------------------------------------
def _mixer_gemm_kernel(m_ref, x_ref, o_ref, acc_ref):
    @pl.when(pl.program_id(2) == 0)
    def _():
        acc_ref[...] = jnp.zeros_like(acc_ref)

    acc_ref[...] += jnp.dot(
        m_ref[...], x_ref[...], preferred_element_type=jnp.float32
    )

    @pl.when(pl.program_id(2) == pl.num_programs(2) - 1)
    def _():
        o_ref[...] = acc_ref[...].astype(o_ref.dtype)


def fast_spectral_mixer(
    x: jnp.ndarray,
    freq_weights: jnp.ndarray,
    *,
    tm: int | None = None,
    tn: int | None = None,
    tk: int | None = None,
) -> jnp.ndarray:
    B, L, D = x.shape
    N = B * D
    M = build_mixing_matrix(freq_weights, L)

    # Fold batch into the matmul N dimension: (B, L, D) -> (L, B*D).
    x2 = jnp.transpose(x, (1, 0, 2)).reshape(L, N)

    # GEMM tile sizes: lane dims multiples of 128, sublane dims multiples of 8;
    # shrink toward the (padded) full extent for tiny problems.
    tm = tm if tm is not None else min(256, _round_up(L, 8))
    tk = tk if tk is not None else min(512, _round_up(L, 128))
    tn = tn if tn is not None else min(256, _round_up(N, 128))

    Lm = _round_up(L, tm)   # padded rows of M / out
    Lk = _round_up(L, tk)   # padded contraction dim
    Np = _round_up(N, tn)   # padded columns (lane-dense output)

    # bf16 operands (MXU-native on v5e/v6e/v7x); zero padding keeps the math exact.
    m_pad = jnp.zeros((Lm, Lk), jnp.bfloat16).at[:L, :L].set(M.astype(jnp.bfloat16))
    x_pad = jnp.zeros((Lk, Np), jnp.bfloat16).at[:L, :N].set(x2.astype(jnp.bfloat16))

    grid = (Lm // tm, Np // tn, Lk // tk)

    out2 = pl.pallas_call(
        _mixer_gemm_kernel,
        out_shape=jax.ShapeDtypeStruct((Lm, Np), jnp.float32),
        grid_spec=pltpu.PrefetchScalarGridSpec(
            num_scalar_prefetch=0,
            grid=grid,
            in_specs=[
                pl.BlockSpec((tm, tk), lambda i, j, k: (i, k)),
                pl.BlockSpec((tk, tn), lambda i, j, k: (k, j)),
            ],
            out_specs=pl.BlockSpec((tm, tn), lambda i, j, k: (i, j)),
            scratch_shapes=[pltpu.VMEM((tm, tn), jnp.float32)],
        ),
        compiler_params=pltpu.CompilerParams(
            dimension_semantics=("parallel", "parallel", "arbitrary"),
        ),
        cost_estimate=pl.CostEstimate(
            flops=2 * Lm * Np * Lk,
            transcendentals=0,
            bytes_accessed=Lm * Lk * 2 + Lk * Np * 2 + Lm * Np * 4,
        ),
    )(m_pad, x_pad)

    out2 = out2[:L, :N]                                  # strip padding
    out = jnp.transpose(out2.reshape(L, B, D), (1, 0, 2))  # (B, L, D)
    return out.astype(x.dtype)


# ----------------------------------------------------------------------------
# Pure-JAX reference (mirrors the PyTorch forward exactly, via FFT).
# ----------------------------------------------------------------------------
def reference_mixer(x: jnp.ndarray, freq_weights: jnp.ndarray) -> jnp.ndarray:
    B, L, D = x.shape
    x_fft = jnp.fft.rfft(x, axis=1)
    freq_size = min(x_fft.shape[1], freq_weights.shape[0])
    scale = freq_weights[:freq_size].astype(x_fft.real.dtype)[None, :, None]
    x_fft = x_fft.at[:, :freq_size].multiply(scale)
    return jnp.fft.irfft(x_fft, n=L, axis=1).astype(x.dtype)


if __name__ == "__main__":
    # Module config: seq_len=8, dim=32  ->  freq_dim = min(8//2 + 1, 32) = 5
    B, L, D = 2, 8, 32

    key = jax.random.PRNGKey(0)
    k_w, k_x = jax.random.split(key)

    # Deterministic parameter init matching nn.Parameter(torch.randn(freq_dim) * 0.02)
    freq_dim = min(L // 2 + 1, 32)
    freq_weights = jax.random.normal(k_w, (freq_dim,), dtype=jnp.float32) * 0.02

    x = jax.random.normal(k_x, (B, L, D), dtype=jnp.float32)

    out = fast_spectral_mixer(x, freq_weights)
    out = jax.block_until_ready(out)

    ref = jax.block_until_ready(reference_mixer(x, freq_weights))
    assert out.shape == (B, L, D)
    # bf16 matmul operands with f32 accumulation -> slightly looser tolerance.
    assert jnp.allclose(out, ref, atol=2e-3, rtol=2e-2), (
        f"mismatch vs FFT reference, max|diff|={float(jnp.max(jnp.abs(out - ref)))}"
    )

    print("KERNEL_OK")
</pallas_src>

<mosaic_0001>
module attributes {stable_mosaic.version = 11 : i64} {
  func.func @_mixer_gemm_kernel(%arg0: i32, %arg1: i32, %arg2: i32, %arg3: memref<8x128xbf16, #tpu.memory_space<vmem>>, %arg4: memref<128x128xbf16, #tpu.memory_space<vmem>>, %arg5: memref<8x128xf32, #tpu.memory_space<vmem>>, %arg6: memref<8x128xf32, #tpu.memory_space<vmem>>) attributes {dimension_semantics = [#tpu.dimension_semantics<parallel>, #tpu.dimension_semantics<parallel>, #tpu.dimension_semantics<arbitrary>], iteration_bounds = array<i64: 1, 1, 1>, scalar_prefetch = 0 : i64, scratch_operands = 1 : i64, tpu.core_type = #tpu.core_type<tc>, window_params = [{transform_indices = @transform_0, window_bounds = array<i64: 8, 128>}, {transform_indices = @transform_1, window_bounds = array<i64: 128, 128>}, {transform_indices = @transform_2, window_bounds = array<i64: 8, 128>}]} {
    %c0_i32 = arith.constant 0 : i32
    %0 = arith.cmpi eq, %arg2, %c0_i32 : i32
    %1 = arith.extui %0 : i1 to i32
    %c0_i32_0 = arith.constant 0 : i32
    %2 = arith.cmpi ne, %1, %c0_i32_0 : i32
    scf.if %2 {
      %cst_10 = arith.constant 0.000000e+00 : f32
      %12 = vector.broadcast %cst_10 : f32 to vector<8x128xf32>
      %c0_11 = arith.constant 0 : index
      %c0_12 = arith.constant 0 : index
      %13 = vector.load %arg6[%c0_11, %c0_12] : memref<8x128xf32, #tpu.memory_space<vmem>>, vector<8x128xf32>
      tpu.vector_store %arg6[%c0_11, %c0_12], %12 {strides = array<i32>} : memref<8x128xf32, #tpu.memory_space<vmem>>, vector<8x128xf32>,
    } else {
    }
    %c0 = arith.constant 0 : index
    %c0_1 = arith.constant 0 : index
    %3 = vector.load %arg6[%c0, %c0_1] : memref<8x128xf32, #tpu.memory_space<vmem>>, vector<8x128xf32>
    %c0_2 = arith.constant 0 : index
    %c0_3 = arith.constant 0 : index
    %4 = vector.load %arg3[%c0_2, %c0_3] : memref<8x128xbf16, #tpu.memory_space<vmem>>, vector<8x128xbf16>
    %c0_4 = arith.constant 0 : index
    %c0_5 = arith.constant 0 : index
    %5 = vector.load %arg4[%c0_4, %c0_5] : memref<128x128xbf16, #tpu.memory_space<vmem>>, vector<128x128xbf16>
    %cst = arith.constant dense<0.000000e+00> : vector<8x128xf32>
    %6 = tpu.matmul %4, %5, %cst {dimension_numbers = #tpu.dot_dimension_numbers<[1], [0], [0], [1], [0, 0, 1, 1], [], []>} : vector<8x128xbf16>, vector<128x128xbf16>, vector<8x128xf32> -> vector<8x128xf32>
    %7 = arith.addf %3, %6 : vector<8x128xf32>
    %c0_6 = arith.constant 0 : index
    %c0_7 = arith.constant 0 : index
    %8 = vector.load %arg6[%c0_6, %c0_7] : memref<8x128xf32, #tpu.memory_space<vmem>>, vector<8x128xf32>
    tpu.vector_store %arg6[%c0_6, %c0_7], %7 {strides = array<i32>} : memref<8x128xf32, #tpu.memory_space<vmem>>, vector<8x128xf32>,
    %c0_i32_8 = arith.constant 0 : i32
    %9 = arith.cmpi eq, %arg2, %c0_i32_8 : i32
    %10 = arith.extui %9 : i1 to i32
    %c0_i32_9 = arith.constant 0 : i32
    %11 = arith.cmpi ne, %10, %c0_i32_9 : i32
    scf.if %11 {
      %c0_10 = arith.constant 0 : index
      %c0_11 = arith.constant 0 : index
      %12 = vector.load %arg6[%c0_10, %c0_11] : memref<8x128xf32, #tpu.memory_space<vmem>>, vector<8x128xf32>
      %c0_12 = arith.constant 0 : index
      %c0_13 = arith.constant 0 : index
      %13 = vector.load %arg5[%c0_12, %c0_13] : memref<8x128xf32, #tpu.memory_space<vmem>>, vector<8x128xf32>
      tpu.vector_store %arg5[%c0_12, %c0_13], %12 {strides = array<i32>} : memref<8x128xf32, #tpu.memory_space<vmem>>, vector<8x128xf32>,
    } else {
    }
    return
  }
  func.func @transform_0(%arg0: i32, %arg1: i32, %arg2: i32) -> (i32, i32) {
    %c0_i32 = arith.constant 0 : i32
    return %arg0, %arg2 : i32, i32
  }
  func.func @transform_1(%arg0: i32, %arg1: i32, %arg2: i32) -> (i32, i32) {
    %c0_i32 = arith.constant 0 : i32
    return %arg2, %arg1 : i32, i32
  }
  func.func @transform_2(%arg0: i32, %arg1: i32, %arg2: i32) -> (i32, i32) {
    %c0_i32 = arith.constant 0 : i32
    return %arg0, %arg1 : i32, i32
  }
}

</mosaic_0001>

<bundles_post_ra>
// kernel: tpu_custom_call.1
= control target key start
LH: loop header
LB: loop body
LE: loop exit
PB: predicated region body
PF: predicated region fallthrough
CT: control target
= control target key end

     0   :  { %7 = vsyncpa [#allocation4], 0  ;;  %s303_s0 = inlined_call_operand.hbm [shape: bf16[8,128], index: 0, kind: input, shape index: {}]   ;;  %s304_s1 = inlined_call_operand.hbm [shape: bf16[128,128], index: 1, kind: input, shape index: {}]   ;;  %s305_s2 = inlined_call_operand.hbm [shape: f32[8,128], index: 2, kind: output, shape index: {}]  }
   0x1   :  { %8 = vsyncpa [#allocation7], 0 }
   0x2   :  { %9 = vsyncpa [#allocation5], 0  ;;  %s15_s11 = sshll.u32 %s303_s0, 4  ;;  %s274_s12 = smov [#allocation3]   ;;  %s16_s11 = int_to_ptr.hbm [resolvable:$true] %s15_s11 }
   0x3   :  { %s17_s13 = sshll.u32 %s274_s12, 4  ;;  %s25_s16 = sshll.u32 %s304_s1, 4  ;;  %s18_s13 = int_to_ptr.vmem [resolvable:$true] %s17_s13  ;;  %s26_s16 = int_to_ptr.hbm [resolvable:$true] %s25_s16 }
   0x4   :  { %20 = dma.hbm_to_vmem [thread:$0]  %s16_s11, 64, %s18_s13, [#allocation4]  }
   0x5   :  { %s275_s17 = smov [#allocation6]   ;;  %s276_s19 = smov 64  }
   0x6   :  { %s27_s18 = sshll.u32 %s275_s17, 4  ;;  %s277_s20 = smov 4   ;;  %s28_s18 = int_to_ptr.vmem [resolvable:$true] %s27_s18 }
   0x7   :  { %33 = dma.hbm_to_vmem [thread:$0]  %s26_s16, 1024, %s28_s18, [#allocation7], %s276_s19, %s276_s19, %s277_s20  }
   0x8   :  { %268 = dma.done.wait [#allocation4], 64  }
   0x9   :  { %269 = vsyncadd [#allocation4], 4294967232 }
   0xa   :  { %270 = dma.done.wait [#allocation7], 1024  }
   0xb   :  { %271 = vsyncadd [#allocation7], 4294966272  ;;  %v190_v0 = vld [vmem:[#allocation6 + $0x38] sm:$0xff]  ;;  %v189_v1 = vld [vmem:[#allocation6 + $0x30] sm:$0xff]  ;;  %s278_s0 = smov [#allocation8]   ;;  %s140_s23 = sshll.u32 %s305_s2, 4  ;;  %s141_s23 = int_to_ptr.hbm [resolvable:$true] %s140_s23 }
   0xc   :  { %113 = vmatpush.bf16.msra.mxu0 %v190_v0  ;;  %v188_v2 = vld [vmem:[#allocation6 + $0x28] sm:$0xff]  ;;  %v187_v3 = vld [vmem:[#allocation6 + $0x20] sm:$0xff]  ;;  %v186_v4 = vld [vmem:[#allocation6 + $0x18] sm:$0xff]  ;;  %s138_s1 = sshll.u32 %s278_s0, 4  ;;  %s139_s1 = int_to_ptr.vmem [resolvable:$true] %s138_s1 }
   0xd   :  { %v185_v5 = vld [vmem:[#allocation6 + $0x10] sm:$0xff]  ;;  %v184_v6 = vld [vmem:[#allocation6 + $0x8] sm:$0xff]  ;;  %v183_v7 = vld [vmem:[#allocation6] sm:$0xff] }
   0xe   :  { %v48_v8 = vld [vmem:[#allocation3] sm:$0xf] }
  0x10   :  { %114 = vmatpush.bf16.msra.mxu0 %v189_v1 }
  0x14   :  { %115 = vmatpush.bf16.msra.mxu0 %v188_v2 }
  0x18   :  { %116 = vmatpush.bf16.msra.mxu0 %v187_v3 }
  0x1c   :  { %117 = vmatpush.bf16.msra.mxu0 %v186_v4 }
  0x20   :  { %118 = vmatpush.bf16.msra.mxu0 %v185_v5 }
  0x24   :  { %119 = vmatpush.bf16.msra.mxu0 %v184_v6 }
  0x28   :  { %120 = vmatpush.bf16.msra.mxu0 %v183_v7 }
  0x2b   :  { %121 = vmatmul.bf16.vlgmr.msra.gmra.mxu0 %v48_v8 }
  0xa8   :  { %v122_v9 = vpop.f32.mrf.mxu0 }
  0xa9   :  { %132 = vst [vmem:[#allocation8] sm:$0xff] %v122_v9 }
  0xaa   :  { %143 = dma.vmem_to_hbm [thread:$0]  %s139_s1, 128, %s141_s23, [#allocation5]  }
  0xb0   :  { %v124_v10 = vpop.f32.mrf.mxu0 }
  0xb1   :  { %272 = dma.done.wait [#allocation5], 128  }
  0xb2   :  { %273 = vsyncadd [#allocation5], 4294967168 }
  0xb3   :  { %148 = vsyncpa [#allocation4], 1 }
  0xb4   :  { %149 = vsyncpa [#allocation7], 1 }
  0xb5   :  { %150 = vsyncpa [#allocation5], 1 }

</bundles_post_ra>
